<compile_context>
chip_gen: v7x
topology: tpu7x:2x2x1
jax: 0.10.0
libtpu: 0.0.40
codegen_flags: <defaults>
</compile_context>

<pallas_src>
import functools

import jax
import jax.numpy as jnp
from jax.experimental import pallas as pl
from jax.experimental.pallas import tpu as pltpu


def _kd_loss_kernel(student_ref, teacher_ref, labels_ref, part_ref, *,
                    inv_t, ignore_index, t_is_one, n_rows, has_tail):
    logits = student_ref[...].astype(jnp.float32)      # (TN, C) student
    t_logits = teacher_ref[...].astype(jnp.float32)    # (TN, C) teacher
    labels = labels_ref[...]                            # (TN, 1) int32
    tn, c = logits.shape

    # ---- shared student stabilization (row max computed once) --------------
    m = jnp.max(logits, axis=1, keepdims=True)
    z = logits - m                                       # (TN, C)
    s = z if t_is_one else z * inv_t                     # == (logits/T) - max
    lse_s = jnp.log(jnp.sum(jnp.exp(s), axis=1, keepdims=True))   # (TN, 1)
    log_q = s - lse_s                                    # student log_softmax(/T)

    # ---- KL(softmax(teacher/T) || softmax(student/T)) row sums --------------
    t = t_logits if t_is_one else t_logits * inv_t
    t = t - jnp.max(t, axis=1, keepdims=True)
    exp_t = jnp.exp(t)
    denom = jnp.sum(exp_t, axis=1, keepdims=True)        # (TN, 1)
    log_denom = jnp.log(denom)
    # sum_j p_j*(log p_j - log q_j) == sum_j exp_t*(t - log_q)/denom - log_denom
    kl_rows = (jnp.sum(exp_t * (t - log_q), axis=1, keepdims=True) / denom
               - log_denom)                              # (TN, 1)

    # ---- cross entropy (no one-hot matrix; gather label logit) --------------
    lse_z = lse_s if t_is_one else jnp.log(
        jnp.sum(jnp.exp(z), axis=1, keepdims=True))
    col = jax.lax.broadcasted_iota(jnp.int32, (tn, c), 1)
    z_label = jnp.sum(jnp.where(col == labels, z, 0.0), axis=1, keepdims=True)
    nll = lse_z - z_label                                # (TN, 1)

    valid_b = labels != ignore_index                     # (TN, 1) bool
    if has_tail:
        # Mask rows of the (partial) last block that lie past N.  Use selects,
        # not multiplies, so unspecified OOB data (possibly Inf/NaN) can never
        # leak into the accumulators.
        row_id = (pl.program_id(0) * tn
                  + jax.lax.broadcasted_iota(jnp.int32, (tn, 1), 0))
        in_range = row_id < n_rows
        valid_b = jnp.logical_and(valid_b, in_range)
        kl_rows = jnp.where(in_range, kl_rows, 0.0)

    kl_part = jnp.sum(kl_rows)
    nll_part = jnp.sum(jnp.where(valid_b, nll, 0.0))
    valid_part = jnp.sum(valid_b.astype(jnp.float32))

    # ---- lane-dense partial-sum block: sublane 0/1/2 = KL / NLL / count -----
    sub = jax.lax.broadcasted_iota(jnp.int32, (1, 8, 128), 1)
    part_ref[...] = jnp.where(
        sub == 0, kl_part,
        jnp.where(sub == 1, nll_part,
                  jnp.where(sub == 2, valid_part, 0.0)))


def kd_loss(outputs, labels, teacher_outputs, alpha, temperature,
            ignore_index=-100, max_tile_rows=None):
    """Pallas implementation of KDLoss.forward (reduction='mean')."""
    n, c = outputs.shape
    alpha = float(alpha)
    temperature = float(temperature)
    t_is_one = (temperature == 1.0)

    # ---- generation-aware VMEM budget -----------------------------------------
    try:
        vmem_cap = int(pltpu.get_tpu_info().vmem_capacity_bytes)
    except Exception:
        vmem_cap = 64 * 1024 * 1024
    vmem_limit = min(int(vmem_cap * 0.75), 100 * 1024 * 1024)

    itemsize = max(jnp.dtype(outputs.dtype).itemsize,
                   jnp.dtype(teacher_outputs.dtype).itemsize)

    # (a) 2 inputs x 2 pipeline buffers: keep the per-step input blocks to a
    #     few MiB total — BlockSpec pipelining saturates HBM well before that.
    tn_input = (4 * 1024 * 1024) // max(1, 4 * c * itemsize)
    # (b) f32 temporaries actually live per element of the block
    #     (~7 arrays when T == 1, ~10-11 when T != 1).
    temp_bytes = 28 if t_is_one else 44
    per_row = c * (4 * itemsize + temp_bytes) + 64
    tn_vmem = int(vmem_limit * 0.7) // per_row

    tn = max(8, min(tn_input, tn_vmem, 512))
    if max_tile_rows is not None:
        tn = min(tn, max(8, int(max_tile_rows)))
    tn = max(8, (tn // 8) * 8)

    if n <= 8:
        tn = n                       # single full-extent block (no tail)
    else:
        # guarantee >= 2 grid steps so v7x can shard across both TensorCores
        tn = min(tn, max(8, ((n - 1) // 8) * 8))

    num_blocks = pl.cdiv(n, tn)
    has_tail = (n % tn) != 0

    labels2d = labels.astype(jnp.int32).reshape(n, 1)

    kernel = functools.partial(
        _kd_loss_kernel,
        inv_t=1.0 / temperature,
        ignore_index=int(ignore_index),
        t_is_one=t_is_one,
        n_rows=n,
        has_tail=has_tail,
    )

    n_exp = (2 if t_is_one else 3) * n * c
    bytes_accessed = int(outputs.size * outputs.dtype.itemsize
                         + teacher_outputs.size * teacher_outputs.dtype.itemsize
                         + labels2d.size * 4 + num_blocks * 8 * 128 * 4)
    cost = pl.CostEstimate(flops=int(10 * n * c),
                           transcendentals=int(n_exp),
                           bytes_accessed=bytes_accessed)

    partials = pl.pallas_call(
        kernel,
        out_shape=jax.ShapeDtypeStruct((num_blocks, 8, 128), jnp.float32),
        grid=(num_blocks,),
        in_specs=[
            pl.BlockSpec((tn, c), lambda i: (i, 0)),   # student logits
            pl.BlockSpec((tn, c), lambda i: (i, 0)),   # teacher logits
            pl.BlockSpec((tn, 1), lambda i: (i, 0)),   # labels column
        ],
        out_specs=pl.BlockSpec((1, 8, 128), lambda i: (i, 0, 0)),
        compiler_params=pltpu.CompilerParams(
            dimension_semantics=("parallel",),
            vmem_limit_bytes=int(vmem_limit)),
        cost_estimate=cost,
    )(outputs, teacher_outputs, labels2d)

    totals = jnp.sum(partials, axis=0)     # (8, 128)
    kl_sum = totals[0, 0]
    nll_sum = totals[1, 0]
    valid_sum = totals[2, 0]

    kl_mean = kl_sum / jnp.float32(n * c)   # F.kl_div 'mean': N*C divisor
    ce = nll_sum / valid_sum                # NaN if all rows ignored (PyTorch)
    return (kl_mean * jnp.float32(alpha * temperature * temperature)
            + ce * jnp.float32(1.0 - alpha))


def _kd_loss_ref(outputs, labels, teacher_outputs, alpha, temperature,
                 ignore_index=-100):
    """Pure-JAX reference mirroring the PyTorch module."""
    T = temperature
    outputs = outputs.astype(jnp.float32)
    teacher_outputs = teacher_outputs.astype(jnp.float32)
    log_q = jax.nn.log_softmax(outputs / T, axis=1)
    p = jax.nn.softmax(teacher_outputs / T, axis=1)
    log_p = jax.nn.log_softmax(teacher_outputs / T, axis=1)
    kl = jnp.sum(p * (log_p - log_q)) / (outputs.shape[0] * outputs.shape[1])

    logp = jax.nn.log_softmax(outputs, axis=1)
    valid = (labels != ignore_index).astype(jnp.float32)
    safe = jnp.where(labels != ignore_index, labels, 0)
    nll = -jnp.take_along_axis(logp, safe[:, None], axis=1)[:, 0]
    ce = jnp.sum(nll * valid) / jnp.sum(valid)
    return kl * (alpha * T * T) + ce * (1.0 - alpha)


if __name__ == "__main__":
    key = jax.random.PRNGKey(0)
    k1, k2, k3 = jax.random.split(key, 3)

    N, C = 20, 32  # small: batch 20, 32 classes (exercises multi-block + tail mask)
    outputs = jax.random.normal(k1, (N, C), dtype=jnp.float32)
    teacher_outputs = jax.random.normal(k2, (N, C), dtype=jnp.float32)
    labels = jax.random.randint(k3, (N,), 0, C, dtype=jnp.int32)
    labels = labels.at[1].set(-100)  # exercise ignore_index

    ok = True

    # f32 path, forced small tile -> 3 blocks with a masked 4-row tail.
    for alpha, temperature in [(0.7, 2.0), (0.3, 1.0)]:  # also exercise T==1 path
        loss = kd_loss(outputs, labels, teacher_outputs, alpha, temperature,
                       ignore_index=-100, max_tile_rows=8)
        jax.block_until_ready(loss)
        ref = _kd_loss_ref(outputs, labels, teacher_outputs, alpha, temperature,
                           ignore_index=-100)
        if not bool(jnp.allclose(loss, ref, rtol=1e-4, atol=1e-5)):
            ok = False
            print(f"MISMATCH (f32) alpha={alpha} T={temperature}: "
                  f"kernel={float(loss)} ref={float(ref)}")

    # bf16 inputs at the call boundary (half HBM traffic); kernel upcasts to f32.
    out_bf16 = outputs.astype(jnp.bfloat16)
    tch_bf16 = teacher_outputs.astype(jnp.bfloat16)
    alpha, temperature = 0.5, 2.0
    loss_bf16 = kd_loss(out_bf16, labels, tch_bf16, alpha, temperature,
                        ignore_index=-100)
    jax.block_until_ready(loss_bf16)
    ref_bf16 = _kd_loss_ref(out_bf16, labels, tch_bf16, alpha, temperature,
                            ignore_index=-100)
    if not bool(jnp.allclose(loss_bf16, ref_bf16, rtol=5e-4, atol=1e-5)):
        ok = False
        print(f"MISMATCH (bf16) alpha={alpha} T={temperature}: "
              f"kernel={float(loss_bf16)} ref={float(ref_bf16)}")

    if not ok:
        raise SystemExit(1)
    print("KERNEL_OK")
</pallas_src>

<mosaic_0001>
module attributes {stable_mosaic.version = 11 : i64} {
  func.func @_kd_loss_kernel(%arg0: i32, %arg1: memref<8x32xf32, #tpu.memory_space<vmem>>, %arg2: memref<8x32xf32, #tpu.memory_space<vmem>>, %arg3: memref<8x1xi32, #tpu.memory_space<vmem>>, %arg4: memref<1x8x128xf32, #tpu.memory_space<vmem>>) attributes {dimension_semantics = [#tpu.dimension_semantics<parallel>], iteration_bounds = array<i64: 3>, scalar_prefetch = 0 : i64, scratch_operands = 0 : i64, tpu.core_type = #tpu.core_type<tc>, window_params = [{transform_indices = @transform_0, window_bounds = array<i64: 8, 32>}, {transform_indices = @transform_1, window_bounds = array<i64: 8, 32>}, {transform_indices = @transform_2, window_bounds = array<i64: 8, 1>}, {transform_indices = @transform_3, window_bounds = array<i64: 1, 8, 128>}]} {
    %c0 = arith.constant 0 : index
    %c0_0 = arith.constant 0 : index
    %0 = vector.load %arg1[%c0, %c0_0] : memref<8x32xf32, #tpu.memory_space<vmem>>, vector<8x32xf32>
    %c0_1 = arith.constant 0 : index
    %c0_2 = arith.constant 0 : index
    %1 = vector.load %arg2[%c0_1, %c0_2] : memref<8x32xf32, #tpu.memory_space<vmem>>, vector<8x32xf32>
    %c0_3 = arith.constant 0 : index
    %c0_4 = arith.constant 0 : index
    %2 = vector.load %arg3[%c0_3, %c0_4] : memref<8x1xi32, #tpu.memory_space<vmem>>, vector<8x1xi32>
    %cst = arith.constant dense<0xFF800000> : vector<8xf32>
    %3 = vector.multi_reduction <maximumf>, %0, %cst [1] : vector<8x32xf32> to vector<8xf32>
    %4 = vector.shape_cast %3 : vector<8xf32> to vector<8x1xf32>
    %5 = vector.broadcast %4 : vector<8x1xf32> to vector<8x32xf32>
    %6 = arith.subf %0, %5 : vector<8x32xf32>
    %cst_5 = arith.constant 5.000000e-01 : f32
    %7 = vector.broadcast %cst_5 : f32 to vector<8x32xf32>
    %8 = arith.mulf %6, %7 : vector<8x32xf32>
    %9 = math.exp %8 : vector<8x32xf32>
    %cst_6 = arith.constant dense<0.000000e+00> : vector<8xf32>
    %10 = vector.multi_reduction <add>, %9, %cst_6 [1] : vector<8x32xf32> to vector<8xf32>
    %11 = vector.shape_cast %10 : vector<8xf32> to vector<8x1xf32>
    %12 = math.log %11 : vector<8x1xf32>
    %13 = vector.broadcast %12 : vector<8x1xf32> to vector<8x32xf32>
    %14 = arith.subf %8, %13 : vector<8x32xf32>
    %cst_7 = arith.constant 5.000000e-01 : f32
    %15 = vector.broadcast %cst_7 : f32 to vector<8x32xf32>
    %16 = arith.mulf %1, %15 : vector<8x32xf32>
    %cst_8 = arith.constant dense<0xFF800000> : vector<8xf32>
    %17 = vector.multi_reduction <maximumf>, %16, %cst_8 [1] : vector<8x32xf32> to vector<8xf32>
    %18 = vector.shape_cast %17 : vector<8xf32> to vector<8x1xf32>
    %19 = vector.broadcast %18 : vector<8x1xf32> to vector<8x32xf32>
    %20 = arith.subf %16, %19 : vector<8x32xf32>
    %21 = math.exp %20 : vector<8x32xf32>
    %cst_9 = arith.constant dense<0.000000e+00> : vector<8xf32>
    %22 = vector.multi_reduction <add>, %21, %cst_9 [1] : vector<8x32xf32> to vector<8xf32>
    %23 = vector.shape_cast %22 : vector<8xf32> to vector<8x1xf32>
    %24 = math.log %23 : vector<8x1xf32>
    %25 = arith.subf %20, %14 : vector<8x32xf32>
    %26 = arith.mulf %21, %25 : vector<8x32xf32>
    %cst_10 = arith.constant dense<0.000000e+00> : vector<8xf32>
    %27 = vector.multi_reduction <add>, %26, %cst_10 [1] : vector<8x32xf32> to vector<8xf32>
    %28 = vector.shape_cast %27 : vector<8xf32> to vector<8x1xf32>
    %29 = arith.divf %28, %23 : vector<8x1xf32>
    %30 = arith.subf %29, %24 : vector<8x1xf32>
    %31 = math.exp %6 : vector<8x32xf32>
    %cst_11 = arith.constant dense<0.000000e+00> : vector<8xf32>
    %32 = vector.multi_reduction <add>, %31, %cst_11 [1] : vector<8x32xf32> to vector<8xf32>
    %33 = vector.shape_cast %32 : vector<8xf32> to vector<8x1xf32>
    %34 = math.log %33 : vector<8x1xf32>
    %35 = tpu.iota {dimensions = array<i32: 1>} : vector<8x32xi32>
    %36 = vector.broadcast %2 : vector<8x1xi32> to vector<8x32xi32>
    %37 = arith.cmpi eq, %35, %36 : vector<8x32xi32>
    %cst_12 = arith.constant 0.000000e+00 : f32
    %38 = vector.broadcast %cst_12 : f32 to vector<8x32xf32>
    %39 = arith.select %37, %6, %38 : vector<8x32xi1>, vector<8x32xf32>
    %cst_13 = arith.constant dense<0.000000e+00> : vector<8xf32>
    %40 = vector.multi_reduction <add>, %39, %cst_13 [1] : vector<8x32xf32> to vector<8xf32>
    %41 = vector.shape_cast %40 : vector<8xf32> to vector<8x1xf32>
    %42 = arith.subf %34, %41 : vector<8x1xf32>
    %c-100_i32 = arith.constant -100 : i32
    %43 = vector.broadcast %c-100_i32 : i32 to vector<8x1xi32>
    %44 = arith.cmpi ne, %2, %43 : vector<8x1xi32>
    %c8_i32 = arith.constant 8 : i32
    %45 = arith.muli %arg0, %c8_i32 : i32
    %46 = tpu.iota {dimensions = array<i32: 0>} : vector<8x1xi32>
    %47 = vector.broadcast %45 : i32 to vector<8x1xi32>
    %48 = arith.addi %47, %46 : vector<8x1xi32>
    %c20_i32 = arith.constant 20 : i32
    %49 = vector.broadcast %c20_i32 : i32 to vector<8x1xi32>
    %50 = arith.cmpi slt, %48, %49 : vector<8x1xi32>
    %51 = arith.andi %44, %50 : vector<8x1xi1>
    %cst_14 = arith.constant 0.000000e+00 : f32
    %52 = vector.broadcast %cst_14 : f32 to vector<8x1xf32>
    %53 = arith.select %50, %30, %52 : vector<8x1xi1>, vector<8x1xf32>
    %54 = vector.shape_cast %53 : vector<8x1xf32> to vector<1x8x1xf32>
    %cst_15 = arith.constant dense<0.000000e+00> : vector<1xf32>
    %55 = vector.multi_reduction <add>, %54, %cst_15 [1, 2] : vector<1x8x1xf32> to vector<1xf32>
    %56 = vector.shape_cast %55 : vector<1xf32> to vector<1x1x1xf32>
    %57 = vector.extract %56[0, 0, 0] : f32 from vector<1x1x1xf32>
    %cst_16 = arith.constant 0.000000e+00 : f32
    %58 = vector.broadcast %cst_16 : f32 to vector<8x1xf32>
    %59 = arith.select %51, %42, %58 : vector<8x1xi1>, vector<8x1xf32>
    %60 = vector.shape_cast %59 : vector<8x1xf32> to vector<1x8x1xf32>
    %cst_17 = arith.constant dense<0.000000e+00> : vector<1xf32>
    %61 = vector.multi_reduction <add>, %60, %cst_17 [1, 2] : vector<1x8x1xf32> to vector<1xf32>
    %62 = vector.shape_cast %61 : vector<1xf32> to vector<1x1x1xf32>
    %63 = vector.extract %62[0, 0, 0] : f32 from vector<1x1x1xf32>
    %64 = arith.extui %51 : vector<8x1xi1> to vector<8x1xi32>
    %65 = arith.sitofp %64 : vector<8x1xi32> to vector<8x1xf32>
    %66 = vector.shape_cast %65 : vector<8x1xf32> to vector<1x8x1xf32>
    %cst_18 = arith.constant dense<0.000000e+00> : vector<1xf32>
    %67 = vector.multi_reduction <add>, %66, %cst_18 [1, 2] : vector<1x8x1xf32> to vector<1xf32>
    %68 = vector.shape_cast %67 : vector<1xf32> to vector<1x1x1xf32>
    %69 = vector.extract %68[0, 0, 0] : f32 from vector<1x1x1xf32>
    %70 = tpu.iota {dimensions = array<i32: 1>} : vector<1x8x128xi32>
    %c0_i32 = arith.constant 0 : i32
    %71 = vector.broadcast %c0_i32 : i32 to vector<1x8x128xi32>
    %72 = arith.cmpi eq, %70, %71 : vector<1x8x128xi32>
    %c1_i32 = arith.constant 1 : i32
    %73 = vector.broadcast %c1_i32 : i32 to vector<1x8x128xi32>
    %74 = arith.cmpi eq, %70, %73 : vector<1x8x128xi32>
    %c2_i32 = arith.constant 2 : i32
    %75 = vector.broadcast %c2_i32 : i32 to vector<1x8x128xi32>
    %76 = arith.cmpi eq, %70, %75 : vector<1x8x128xi32>
    %cst_19 = arith.constant 0.000000e+00 : f32
    %77 = vector.broadcast %69 : f32 to vector<1x8x128xf32>
    %78 = vector.broadcast %cst_19 : f32 to vector<1x8x128xf32>
    %79 = arith.select %76, %77, %78 : vector<1x8x128xi1>, vector<1x8x128xf32>
    %80 = vector.broadcast %63 : f32 to vector<1x8x128xf32>
    %81 = arith.select %74, %80, %79 : vector<1x8x128xi1>, vector<1x8x128xf32>
    %82 = vector.broadcast %57 : f32 to vector<1x8x128xf32>
    %83 = arith.select %72, %82, %81 : vector<1x8x128xi1>, vector<1x8x128xf32>
    %c0_20 = arith.constant 0 : index
    %c0_21 = arith.constant 0 : index
    %c0_22 = arith.constant 0 : index
    %84 = vector.load %arg4[%c0_20, %c0_21, %c0_22] : memref<1x8x128xf32, #tpu.memory_space<vmem>>, vector<1x8x128xf32>
    tpu.vector_store %arg4[%c0_20, %c0_21, %c0_22], %83 {strides = array<i32>} : memref<1x8x128xf32, #tpu.memory_space<vmem>>, vector<1x8x128xf32>,
    return
  }
  func.func @transform_0(%arg0: i32) -> (i32, i32) {
    %c0_i32 = arith.constant 0 : i32
    %c0_i32_0 = arith.constant 0 : i32
    return %arg0, %c0_i32 : i32, i32
  }
  func.func @transform_1(%arg0: i32) -> (i32, i32) {
    %c0_i32 = arith.constant 0 : i32
    %c0_i32_0 = arith.constant 0 : i32
    return %arg0, %c0_i32 : i32, i32
  }
  func.func @transform_2(%arg0: i32) -> (i32, i32) {
    %c0_i32 = arith.constant 0 : i32
    %c0_i32_0 = arith.constant 0 : i32
    return %arg0, %c0_i32 : i32, i32
  }
  func.func @transform_3(%arg0: i32) -> (i32, i32, i32) {
    %c0_i32 = arith.constant 0 : i32
    %c0_i32_0 = arith.constant 0 : i32
    %c0_i32_1 = arith.constant 0 : i32
    return %arg0, %c0_i32, %c0_i32_0 : i32, i32, i32
  }
}

</mosaic_0001>

<bundles_post_ra>
// kernel: tpu_custom_call.1
= control target key start
LH: loop header
LB: loop body
LE: loop exit
PB: predicated region body
PF: predicated region fallthrough
CT: control target
= control target key end

     0   :  { %8 = vsyncpa [#allocation3], 0  ;;  %s836_s0 = inlined_call_operand.vmem [shape: f32[20,32], index: 0, kind: input, shape index: {}]   ;;  %s837_s1 = inlined_call_operand.hbm [shape: f32[20,32], index: 1, kind: input, shape index: {}]   ;;  %s838_s2 = inlined_call_operand.vmem [shape: s32[20,1], index: 2, kind: input, shape index: {}]   ;;  %s839_s3 = inlined_call_operand.hbm [shape: f32[3,8,128], index: 3, kind: output, shape index: {}]  }
   0x1   :  { %10 = vsyncpa [#allocation3 + $0x1], 0 }
   0x2   :  { %11 = vsyncpa [#allocation4], 0 }
   0x3   :  { %13 = vsyncpa [#allocation4 + $0x1], 0  ;;  %s644_s12 = smov 0   ;;  %s646_s13 = smov 0  }
   0x4   :  { %s648_s14 = smov 0   ;;  %s650_s15 = smov 0  }
   0x5 LB: > { %s665_s16 = sadd.s32 4294967295, %s618_s15   ;;  %s436_s17 = sadd.s32 4294967294, %s618_s15   ;;  %s618_s15 = sphi %s650_s15, %s853_s15   ;;  %s614_s14 = sphi %s648_s14, %s852_s14   ;;  %s610_s13 = sphi %s646_s13, %s851_s13   ;;  %s606_s12 = sphi %s644_s12, %s850_s12  }
   0x6   : > { %s669_s18 = sadd.s32 1, %s618_s15   ;;  %s52_s19 = sadd.s32 1, %s614_s14 }
   0x7   : > { %s49_s20 = ssub.s32 %s618_s15, %s669_s18  ;;  %p59_p0 = scmp.ne.s32.totalorder %s614_s14, %s610_s13 }
   0x8   : > { %p50_p1 = scmp.eq.s32.totalorder %s49_s20, 0  ;;  %p60_p2 = scmp.eq.s32.totalorder %s618_s15, 0 }
   0x9   : > { %p65_p3 = scmp.ne.s32.totalorder %s610_s13, %s606_s12  ;;  %p66_p4 = scmp.eq.s32.totalorder %s665_s16, 0 }
   0xa   : > { %s681_s21 = scalar_select %p50_p1, %s614_s14, %s52_s19  }
   0xb   : > { %p683_p5 = por %p60_p2, %p59_p0  ;;  %p687_p6 = por %p66_p4, %p65_p3 }
   0xc   : > { %p115_p7 = scmp.eq.s32.totalorder %s665_s16, 2  ;;  %p121_p8 = scmp.eq.s32.totalorder %s436_s17, 2 }
   0xd   : > { %p470_p9 = scmp.lt.s32.totalorder %s618_s15, 3  ;;  %s148_s26 = sand.u32 1, %s614_s14  }
   0xe   : > { %p693_p10 = por %p115_p7, %p59_p0  ;;  %p697_p11 = por %p121_p8, %p65_p3 }
   0xf   : > { %s440_s27 = sshll.u32 %s618_s15, 7  ;;  %s439_s28 = sshll.u32 %s148_s26, 3 }
  0x10   : > { %s843_s24 = scalar_select %p693_p10, 1, 0 }
  0x11   : > { %s844_s25 = scalar_select %p697_p11, 1, 0 }
  0x12   : > { %s706_s4 = scalar_lea.hbm %s837_s1, %s440_s27  ;;  %s152_s5 = scalar_lea.vmem [#allocation2], %s439_s28 }
  0x13   : > { %s159_s6 = sshll.u32 %s152_s5, 4  ;;  %p710_p12 = pnand %p470_p9, %p683_p5  ;;  %s714_s6 = int_to_ptr.vmem [resolvable:$true] %s159_s6 }
  0x14   : > { %s149_s8 = scalar_lea.sflag [#allocation3], %s148_s26  ;;  %s522_s9 = scalar_lea.hbm %s706_s4, 128 }
  0x15   : > { %p523_p1 = scmp.ne.s32.totalorder %s706_s4, %s522_s9  ;;  %p524_p2 = pneg %p710_p12 }
  0x16   : > { %s527_s17 = scalar_lea.hbm %s837_s1, 384  ;;  %p528_p5 = scmp.lt.u32.totalorder %s706_s4, %s837_s1 }
  0x17   : > { %p525_p3 = pnand %p524_p2, %p523_p1  ;;  %p529_p7 = scmp.lt.u32.totalorder %s527_s17, %s522_s9 }
  0x18   : > { %p531_p9 = scmp.lt.u32.totalorder %s522_s9, %s706_s4 }
  0x19   : > { %p526_p4 = pneg %p525_p3  ;;  %p530_p8 = por %p529_p7, %p528_p5 }
  0x1b   : > { %p532_p13 = por %p531_p9, %p530_p8 }
  0x1d   : > { %p533_p0 = pnand %p532_p13, %p526_p4 }
  0x1f   : > { %536 = shalt.err (!%p533_p0)
}
  0x20   : > { %s537_s22 = scalar_lea.vmem %s714_s6, 128  ;;  %s620_s26 = smov [#allocation2]  }
  0x21   : > { %p538_p1 = scmp.ne.s32.totalorder %s714_s6, %s537_s22  ;;  %s542_s27 = sshll.u32 %s620_s26, 4  ;;  %s543_s27 = int_to_ptr.vmem [resolvable:$false] %s542_s27 }
  0x22   : > { %s544_s28 = scalar_lea.vmem %s543_s27, 256  ;;  %p545_p10 = scmp.lt.s32.totalorder %s714_s6, %s543_s27 }
  0x23   : > { %p540_p3 = pnand %p538_p1, %p524_p2  ;;  %p546_p5 = scmp.lt.s32.totalorder %s544_s28, %s537_s22 }
  0x25   : > { %p541_p11 = pneg %p540_p3  ;;  %p547_p7 = por %p546_p5, %p545_p10 }
  0x27   : > { %p548_p8 = pnand %p547_p7, %p541_p11 }
  0x29   : > { %551 = shalt.err (!%p548_p8)
}
  0x2a   : > { %465 = dma.hbm_to_vmem [thread:$0]  (!%p710_p12), %s706_s4, 128, %s714_s6, %s149_s8  }
  0x2b   : > { %p846_p13 = scmp.lt.s32.totalorder %s618_s15, 4  ;;  %p847_p0 = scmp.ge.s32.totalorder %s618_s15, 1 }
  0x2d   : > { %p172_p2 = pnand %p847_p0, %p846_p13 }
  0x2e   : > { %s748_s29 = sand.u32 (!%p172_p2), 1, %s610_s13  }
  0x2f   : > { %175 = sbr.rel (%p172_p2) target bundleno = 761 (0x2f9), region = 32  ;;  %s442_s30 = sshll.u32 (!%p172_p2), %s748_s29, 3 }
  0x30   : > { %s178_s5 = scalar_lea.sflag (!%p172_p2), [#allocation3], %s748_s29  ;;  %s181_s7 = scalar_lea.vmem (!%p172_p2), [#allocation2], %s442_s30 }
  0x36   : > { %597 = dma.done.wait (%p687_p6), %s178_s5, 128  }
  0x37   : > { %599 = vsyncadd (%p687_p6), %s178_s5, 4294967168  ;;  %p212_p10 = scmp.lt.s32.totalorder %s665_s16, 2  ;;  %vm223_vm0 = vcmask 261120   ;;  %v221_v1 = vld [vmem:[%s181_s7] sm:$0xff]  ;;  %v621_v5 = vmov 0   ;;  %v264_v22 = vlaneseq  ;;  %s446_s19 = sshll.u32 %s665_s16, 3 }
  0x38   : > { %v237_v3 = vmul.f32 0.5, %v221_v1  ;;  %506 = vset.pattern.permute.xlu1 %v621_v5  ;;  %507 = vset.pattern.permute.xlu0 %v621_v5  ;;  %v279_v36 = vstv %s446_s19  ;;  %vm284_vm4 = vcmask 7168   ;;  %v622_v51 = vmov 0.0   ;;  %s449_s26 = sshll.u32 %s665_s16, 7  ;;  %s211_s28 = scalar_lea.vmem [#allocation5], %s442_s30 }
  0x39   : > { %s760_s4 = scalar_select %p212_p10, %s665_s16, 2  ;;  %v265_v26 = vand.u32 127, %v264_v22  ;;  %v781_v35 = vshrl.u32 %v264_v22, 7 }
  0x3a   : > { %v238_v4 = vsel %vm223_vm0, %v237_v3, -inf  ;;  %s342_s5 = sshll.u32 %s211_s28, 4  ;;  %s329_s16 = scalar_lea.sflag [#allocation4], %s748_s29  ;;  %s795_s5 = int_to_ptr.vmem [resolvable:$true] %s342_s5 }
  0x3b   : > { %s444_s6 = sshll.u32 %s760_s4, 3  ;;  %v280_v37 = vadd.s32 %v279_v36, %v781_v35  ;;  %vm320_vm6 = vcmp.eq.s32.totalorder %v781_v35, 2  ;;  %vm319_vm7 = vcmp.eq.s32.totalorder %v781_v35, 1  ;;  %vm318_vm8 = vcmp.eq.s32.totalorder %v781_v35, 0  ;;  %s552_s30 = scalar_lea.vmem %s795_s5, 128 }
  0x3c   : > { %s215_s10 = scalar_lea.vmem %s836_s0, %s444_s6  ;;  %s219_s17 = scalar_lea.vmem %s838_s2, %s444_s6 }
  0x3d   : > { %v220_v0 = vld [vmem:[%s215_s10] sm:$0xff]  ;;  %vm281_vm3 = vcmp.lt.s32.totalorder %v280_v37, 20  ;;  %s793_s6 = scalar_lea.hbm %s839_s3, %s449_s26  ;;  %p553_p6 = scmp.ne.s32.totalorder %s795_s5, %s552_s30 }
  0x3e   : > { %v224_v2 = vsel %vm223_vm0, %v220_v0, -inf  ;;  %v222_v20 = vld [vmem:[%s219_s17] sm:$0xff]  ;;  %p848_p11 = scmp.ne.s32.totalorder %s843_s24, 0  ;;  %s623_s8 = smov [#allocation5]  }
  0x3f   : > { %225 = vmax.xlane.f32.xlu0 %v224_v2  ;;  %vm275_vm2 = vcmp.ne.s32.totalorder %v222_v20, 4294967196  ;;  %s556_s9 = sshll.u32 %s623_s8, 4  ;;  %s557_s9 = int_to_ptr.vmem [resolvable:$false] %s556_s9 }
  0x40   : > { %vm282_vm5 = vmand %vm275_vm2, %vm281_vm3  ;;  %p554_p12 = pnand %p553_p6, %p848_p11  ;;  %s558_s10 = scalar_lea.vmem %s557_s9, 256 }
  0x41   : > { %v447_v52 = vsel %vm282_vm5, 1.0, %v622_v51  ;;  %p559_p9 = scmp.lt.s32.totalorder %s795_s5, %s557_s9  ;;  %p560_p1 = scmp.lt.s32.totalorder %s558_s10, %s552_s30 }
  0x42   : > { %v308_v54 = vsel %vm284_vm4, %v447_v52, 0.0  ;;  %p555_p4 = pneg %p554_p12 }
  0x43   : > { %239 = vmax.xlane.f32.xlu0 %v238_v4  ;;  %p561_p3 = por %p560_p1, %p559_p9 }
  0x45   : > { %p562_p5 = pnand %p561_p3, %p555_p4 }
  0xcc   : > { %v226_v6 = vpop.xlane.xlu0 %225 }
  0xcd   : > { %v227_v7 = vsub.f32 %v220_v0, %v226_v6 }
  0xcf   : > { %v228_v8 = vmul.f32 0.5, %v227_v7  ;;  %v257_v12 = vmul.f32 1.442695, %v227_v7 }
  0xd0   : > { %v240_v9 = vpop.xlane.xlu0 %239 }
  0xd1   : > { %v229_v10 = vmul.f32 1.442695, %v228_v8  ;;  %v241_v11 = vsub.f32 %v237_v3, %v240_v9 }
  0xd3   : > { %508 = vpow2.f32 %v229_v10  ;;  %v242_v13 = vmul.f32 1.442695, %v241_v11 }
  0xd5   : > { %510 = vpow2.f32 %v242_v13 }
  0xd6   : > { %512 = vpow2.f32 %v257_v12 }
  0xdd   : > { %v509_v14 = vpop.eup %508 }
  0xde   : > { %v231_v15 = vsel %vm223_vm0, %v509_v14, 0.0 }
  0xdf   : > { %v511_v16 = vpop.eup %510  ;;  %232 = vadd.xlane.f32.xlu1 %v231_v15 }
  0xe0   : > { %v244_v17 = vsel %vm223_vm0, %v511_v16, 0.0  ;;  %v513_v18 = vpop.eup %512 }
  0xe1   : > { %245 = vadd.xlane.f32.xlu0 %v244_v17  ;;  %v259_v19 = vsel %vm223_vm0, %v513_v18, 0.0 }
  0xe5   : > { %260 = vadd.xlane.f32.xlu0 %v259_v19 }
  0xf0   : > { %267 = vperm.xlu1 %506, %v222_v20  }
 0x16c   : > { %v233_v21 = vpop.xlane.xlu1 %232 }
 0x16d   : > { %514 = vlog2.f32 %v233_v21 }
 0x16e   : > { %v246_v33 = vpop.xlane.xlu0 %245 }
 0x16f   : > { %516 = vlog2.f32 %v246_v33 }
 0x170   : > { %v268_v27 = vpop.permute.xlu1 %267  ;;  %518 = vrcp.f32 %v246_v33 }
 0x171   : > { %vm269_vm1 = vcmp.eq.s32.totalorder %v265_v26, %v268_v27 }
 0x172   : > { %v270_v31 = vsel %vm269_vm1, %v227_v7, 0.0  ;;  %v261_v34 = vpop.xlane.xlu0 %260 }
 0x173   : > { %v271_v32 = vsel %vm223_vm0, %v270_v31, 0.0  ;;  %520 = vlog2.f32 %v261_v34 }
 0x177   : > { %v515_v23 = vpop.eup %514 }
 0x178   : > { %v235_v24 = vmul.f32 0.6931472, %v515_v23 }
 0x179   : > { %v517_v38 = vpop.eup %516 }
 0x17a   : > { %v236_v25 = vsub.f32 %v228_v8, %v235_v24  ;;  %v519_v39 = vpop.eup %518  ;;  %v248_v42 = vmul.f32 0.6931472, %v517_v38 }
 0x17c   : > { %v249_v28 = vsub.f32 %v241_v11, %v236_v25 }
 0x17d   : > { %v521_v40 = vpop.eup %520 }
 0x17e   : > { %v250_v29 = vmul.f32 %v511_v16, %v249_v28  ;;  %v263_v45 = vmul.f32 0.6931472, %v521_v40 }
 0x180   : > { %v251_v30 = vsel %vm223_vm0, %v250_v29, 0.0 }
 0x181   : > { %252 = vadd.xlane.f32.xlu0 %v251_v30 }
 0x185   : > { %272 = vadd.xlane.f32.xlu0 %v271_v32 }
 0x20e   : > { %v253_v41 = vpop.xlane.xlu0 %252 }
 0x20f   : > { %v255_v43 = vmul.f32 %v519_v39, %v253_v41 }
 0x211   : > { %v256_v44 = vsub.f32 %v255_v43, %v248_v42 }
 0x212   : > { %v273_v46 = vpop.xlane.xlu0 %272 }
 0x213   : > { %v274_v47 = vsub.f32 %v263_v45, %v273_v46  ;;  %v283_v48 = vsel %vm281_vm3, %v256_v44, 0.0 }
 0x214   : > { %v285_v49 = vsel %vm284_vm4, %v283_v48, 0.0 }
 0x215   : > { %286 = vadd.xlane.f32.xlu1 %v285_v49  ;;  %v295_v50 = vsel %vm282_vm5, %v274_v47, 0.0 }
 0x216   : > { %v296_v53 = vsel %vm284_vm4, %v295_v50, 0.0 }
 0x217   : > { %297 = vadd.xlane.f32.xlu0 %v296_v53 }
 0x21b   : > { %309 = vadd.xlane.f32.xlu0 %v308_v54 }
 0x2a2   : > { %v287_v55 = vpop.xlane.xlu1 %286 }
 0x2a3   : > { %v288_v56 = vrot.slane %v287_v55, 4 }
 0x2a4   : > { %v298_v57 = vpop.xlane.xlu0 %297 }
 0x2a5   : > { %v289_v58 = vadd.f32 %v288_v56, %v287_v55  ;;  %v299_v59 = vrot.slane %v298_v57, 4 }
 0x2a7   : > { %v290_v60 = vrot.slane %v289_v58, 2  ;;  %v300_v61 = vadd.f32 %v299_v59, %v298_v57 }
 0x2a8   : > { %v310_v62 = vpop.xlane.xlu0 %309 }
 0x2a9   : > { %v301_v63 = vrot.slane %v300_v61, 2  ;;  %v311_v0 = vrot.slane %v310_v62, 4  ;;  %v291_v1 = vadd.f32 %v290_v60, %v289_v58 }
 0x2ab   : > { %v312_v2 = vadd.f32 %v311_v0, %v310_v62  ;;  %v292_v3 = vrot.slane %v291_v1, 1  ;;  %v302_v4 = vadd.f32 %v301_v63, %v300_v61 }
 0x2ad   : > { %v313_v5 = vrot.slane %v312_v2, 2  ;;  %v293_v6 = vadd.f32 %v292_v3, %v291_v1  ;;  %v303_v7 = vrot.slane %v302_v4, 1 }
 0x2af   : > { %v314_v8 = vadd.f32 %v313_v5, %v312_v2  ;;  %452 = vpush %v293_v6  ;;  %v304_v9 = vadd.f32 %v303_v7, %v302_v4 }
 0x2b1   : > { %454 = vpush %v304_v9  ;;  %v315_v10 = vrot.slane %v314_v8, 1 }
 0x2b3   : > { %v316_v11 = vadd.f32 %v315_v10, %v314_v8 }
 0x2b5   : > { %456 = vpush %v316_v11 }
 0x2e0   : > { %s453_s20 = spop %452 }
 0x2e1   : > { %v325_v15 = vstv %s453_s20 }
 0x2e2   : > { %s455_s22 = spop %454 }
 0x2e3   : > { %v323_v13 = vstv %s455_s22 }
 0x2e6   : > { %s457_s27 = spop %456 }
 0x2e7   : > { %v321_v12 = vstv %s457_s27 }
 0x2e8   : > { %v322_v14 = vsel %vm320_vm6, %v321_v12, 0.0 }
 0x2e9   : > { %v324_v16 = vsel %vm319_vm7, %v323_v13, %v322_v14 }
 0x2ea   : > { %v326_v17 = vsel %vm318_vm8, %v325_v15, %v324_v16 }
 0x2eb   : > { %327 = vst [vmem:[%s211_s28] sm:$0xff] %v326_v17 }
 0x2ec   : > { %565 = shalt.err (!%p562_p5)
}
 0x2ed   : > { %s566_s29 = scalar_lea.hbm %s793_s6, 128  ;;  %s570_s17 = scalar_lea.hbm %s839_s3, 384 }
 0x2ee   : > { %p567_p7 = scmp.ne.s32.totalorder %s793_s6, %s566_s29  ;;  %p571_p0 = scmp.lt.u32.totalorder %s793_s6, %s839_s3 }
 0x2ef   : > { %p572_p2 = scmp.lt.u32.totalorder %s570_s17, %s566_s29  ;;  %p574_p6 = scmp.lt.u32.totalorder %s566_s29, %s793_s6 }
 0x2f0   : > { %p568_p8 = pnand %p567_p7, %p848_p11 }
 0x2f1   : > { %p573_p10 = por %p572_p2, %p571_p0 }
 0x2f2   : > { %p569_p13 = pneg %p568_p8 }
 0x2f3   : > { %p575_p12 = por %p574_p6, %p573_p10 }
 0x2f5   : > { %p576_p4 = pnand %p575_p12, %p569_p13 }
 0x2f7   : > { %579 = shalt.err (!%p576_p4)
}
 0x2f8   : > { %460 = dma.vmem_to_hbm [thread:$0]  (%p848_p11), %s795_s5, 128, %s793_s6, %s329_s16  }
 0x2f9 PF: > { %p471_p9 = scmp.ge.s32.totalorder %s618_s15, 2  ;;  %s354_s22 = sand.u32 1, %s606_s12  }
 0x2fa   : > { %p849_p1 = scmp.ne.s32.totalorder %s844_s25, 0  ;;  %s355_s26 = scalar_lea.sflag [#allocation4], %s354_s22 }
 0x2fc   : > { %p467_p3 = pnand %p471_p9, %p849_p1 }
 0x2fe   : > { %601 = dma.done.wait (!%p467_p3), %s355_s26, 128  }
 0x2ff   : > { %603 = vsyncadd (!%p467_p3), %s355_s26, 4294967168  ;;  %p16_p5 = scmp.ge.s32.totalorder %s669_s18, 5   ;;  %s850_s12 = smov %s610_s13 }
 0x300   : > { %s851_s13 = smov %s614_s14  ;;  %s852_s14 = smov %s681_s21 }
 0x301   : > { %s853_s15 = smov %s669_s18  ;;  %18 = sbr.rel (!%p16_p5) target bundleno = 5 (0x5), region = 83 }
 0x308   :  { %360 = vsyncpa [#allocation3], 1 }
 0x309   :  { %362 = vsyncpa [#allocation3 + $0x1], 1 }
 0x30a   :  { %363 = vsyncpa [#allocation4], 1 }
 0x30b   :  { %365 = vsyncpa [#allocation4 + $0x1], 1 }

</bundles_post_ra>
